<compile_context>
chip_gen: v6e
topology: v6e:2x2x1
jax: 0.10.0
libtpu: 0.0.40
codegen_flags: <defaults>
</compile_context>

<pallas_src>
import functools

import jax
import jax.numpy as jnp
from jax.experimental import pallas as pl
from jax.experimental.pallas import tpu as pltpu


def _quadruplet_loss_kernel(a_ref, p_ref, n1_ref, n2_ref, o_ref,
                            *, margin1, margin2, valid_rows, block_rows):
    """Writes this tile's partial loss-sum, broadcast over a (1, 128) block."""
    i = pl.program_id(0)

    a = a_ref[...].astype(jnp.float32)
    p = p_ref[...].astype(jnp.float32)
    n1 = n1_ref[...].astype(jnp.float32)
    n2 = n2_ref[...].astype(jnp.float32)

    # Fuse before reducing: only two cross-lane (XLU) reductions per tile.
    sp = (a - p) ** 2                                           # (TB, D)
    r1 = jnp.sum(sp - (a - n1) ** 2, axis=1, keepdims=True)     # d_pos - d_neg
    r2 = jnp.sum(sp - (n1 - n2) ** 2, axis=1, keepdims=True)    # d_pos - d_neg_b

    per_sample = (jnp.maximum(margin1 + r1, 0.0)
                  + jnp.maximum(margin2 + r2, 0.0))             # (TB, 1)

    # Tail-tile mask: zero-padded rows would otherwise add relu(m1)+relu(m2).
    row_ids = i * block_rows + jax.lax.broadcasted_iota(
        jnp.int32, (block_rows, 1), 0)
    per_sample = jnp.where(row_ids < valid_rows, per_sample, 0.0)

    partial = jnp.sum(per_sample)                               # scalar
    o_ref[...] = jnp.full((1, 128), partial, dtype=jnp.float32)


def quadruplet_loss(anchor, positive, negative1, negative2,
                    margin1=1.0, margin2=0.5, block_rows=512):
    """Pallas-backed equivalent of QuadrupletLoss(margin1, margin2).forward."""
    assert anchor.shape == positive.shape == negative1.shape == negative2.shape
    assert anchor.ndim == 2
    B, D = anchor.shape

    # Lane-dense feature dim: pad D to a multiple of 128 with zeros.
    d_pad = 128 * pl.cdiv(D, 128)

    # Batch tile: ~1 MiB per f32 input buffer, multiple of 8 sublanes,
    # capped by block_rows and by the (8-aligned) batch itself.
    tb = (1 << 20) // (d_pad * 4)
    tb = max(8, (tb // 8) * 8)
    tb = min(tb, block_rows, 8 * pl.cdiv(B, 8))
    tb = max(8, (tb // 8) * 8)

    num_tiles = pl.cdiv(B, tb)
    b_pad = num_tiles * tb

    def _pad(x):
        if b_pad == B and d_pad == D:
            return x
        return jnp.pad(x, ((0, b_pad - B), (0, d_pad - D)))

    a, p, n1, n2 = (_pad(anchor), _pad(positive),
                    _pad(negative1), _pad(negative2))

    kernel = functools.partial(
        _quadruplet_loss_kernel,
        margin1=float(margin1), margin2=float(margin2),
        valid_rows=B, block_rows=tb)

    in_spec = pl.BlockSpec((tb, d_pad), lambda i: (i, 0))

    # 4 inputs x 2 pipeline buffers x tile, plus slack; cap well under v7x's
    # 64 MiB physical VMEM (and comfortably inside v5e/v6e's 128 MiB).
    vmem_need = 4 * 2 * tb * d_pad * 4
    vmem_limit = int(min(48 << 20, max(vmem_need + (8 << 20), 32 << 20)))

    partials = pl.pallas_call(
        kernel,
        grid=(num_tiles,),
        in_specs=[in_spec, in_spec, in_spec, in_spec],
        out_specs=pl.BlockSpec((1, 128), lambda i: (0, i)),
        out_shape=jax.ShapeDtypeStruct((1, num_tiles * 128), jnp.float32),
        compiler_params=pltpu.CompilerParams(
            dimension_semantics=("parallel",),
            vmem_limit_bytes=vmem_limit),
    )(a, p, n1, n2)

    # Each tile broadcast its partial sum across its 128-lane output block.
    per_tile = partials.reshape(num_tiles, 128)[:, 0]
    return jnp.sum(per_tile) * (1.0 / B)


def _reference(anchor, positive, negative1, negative2, m1=1.0, m2=0.5):
    d_pos = jnp.sum((anchor - positive) ** 2, axis=1)
    d_neg = jnp.sum((anchor - negative1) ** 2, axis=1)
    d_neg_b = jnp.sum((negative1 - negative2) ** 2, axis=1)
    loss = (jax.nn.relu(m1 + d_pos - d_neg)
            + jax.nn.relu(m2 + d_pos - d_neg_b))
    return jnp.mean(loss)


if __name__ == "__main__":
    key = jax.random.PRNGKey(0)
    k_a, k_p, k_n1, k_n2 = jax.random.split(key, 4)

    # Small shapes consistent with the module (batch of embeddings, feature
    # dim summed). Deliberately not (8, 128)-aligned: exercises the tail mask
    # and the lane-dense padding path.
    B, D = 10, 32
    anchor = jax.random.normal(k_a, (B, D), dtype=jnp.float32)
    positive = jax.random.normal(k_p, (B, D), dtype=jnp.float32)
    negative1 = jax.random.normal(k_n1, (B, D), dtype=jnp.float32)
    negative2 = jax.random.normal(k_n2, (B, D), dtype=jnp.float32)

    loss = quadruplet_loss(anchor, positive, negative1, negative2,
                           margin1=1.0, margin2=0.5)
    loss = jax.block_until_ready(loss)
    ref = _reference(anchor, positive, negative1, negative2, 1.0, 0.5)
    assert jnp.allclose(loss, ref, rtol=1e-5, atol=1e-5), (loss, ref)

    # Multi-tile path: grid > 1, parallel batch axis, tail masking, D padding.
    B2, D2 = 300, 160
    xs = [jax.random.normal(k, (B2, D2), dtype=jnp.float32)
          for k in jax.random.split(jax.random.PRNGKey(1), 4)]
    loss2 = quadruplet_loss(*xs, margin1=1.0, margin2=0.5, block_rows=64)
    loss2 = jax.block_until_ready(loss2)
    ref2 = _reference(*xs, 1.0, 0.5)
    assert jnp.allclose(loss2, ref2, rtol=1e-5, atol=1e-5), (loss2, ref2)

    print("KERNEL_OK")
</pallas_src>

<mosaic_0001>
module attributes {stable_mosaic.version = 11 : i64} {
  func.func @_quadruplet_loss_kernel(%arg0: i32, %arg1: memref<16x128xf32, #tpu.memory_space<vmem>>, %arg2: memref<16x128xf32, #tpu.memory_space<vmem>>, %arg3: memref<16x128xf32, #tpu.memory_space<vmem>>, %arg4: memref<16x128xf32, #tpu.memory_space<vmem>>, %arg5: memref<1x128xf32, #tpu.memory_space<vmem>>) attributes {dimension_semantics = [#tpu.dimension_semantics<parallel>], iteration_bounds = array<i64: 1>, scalar_prefetch = 0 : i64, scratch_operands = 0 : i64, tpu.core_type = #tpu.core_type<tc>, window_params = [{transform_indices = @transform_0, window_bounds = array<i64: 16, 128>}, {transform_indices = @transform_1, window_bounds = array<i64: 16, 128>}, {transform_indices = @transform_2, window_bounds = array<i64: 16, 128>}, {transform_indices = @transform_3, window_bounds = array<i64: 16, 128>}, {transform_indices = @transform_4, window_bounds = array<i64: 1, 128>}]} {
    %c0 = arith.constant 0 : index
    %c0_0 = arith.constant 0 : index
    %0 = vector.load %arg1[%c0, %c0_0] : memref<16x128xf32, #tpu.memory_space<vmem>>, vector<16x128xf32>
    %c0_1 = arith.constant 0 : index
    %c0_2 = arith.constant 0 : index
    %1 = vector.load %arg2[%c0_1, %c0_2] : memref<16x128xf32, #tpu.memory_space<vmem>>, vector<16x128xf32>
    %c0_3 = arith.constant 0 : index
    %c0_4 = arith.constant 0 : index
    %2 = vector.load %arg3[%c0_3, %c0_4] : memref<16x128xf32, #tpu.memory_space<vmem>>, vector<16x128xf32>
    %c0_5 = arith.constant 0 : index
    %c0_6 = arith.constant 0 : index
    %3 = vector.load %arg4[%c0_5, %c0_6] : memref<16x128xf32, #tpu.memory_space<vmem>>, vector<16x128xf32>
    %4 = arith.subf %0, %1 : vector<16x128xf32>
    %5 = arith.mulf %4, %4 : vector<16x128xf32>
    %6 = arith.subf %0, %2 : vector<16x128xf32>
    %7 = arith.mulf %6, %6 : vector<16x128xf32>
    %8 = arith.subf %5, %7 : vector<16x128xf32>
    %cst = arith.constant dense<0.000000e+00> : vector<16xf32>
    %9 = vector.multi_reduction <add>, %8, %cst [1] : vector<16x128xf32> to vector<16xf32>
    %10 = vector.shape_cast %9 : vector<16xf32> to vector<16x1xf32>
    %11 = arith.subf %2, %3 : vector<16x128xf32>
    %12 = arith.mulf %11, %11 : vector<16x128xf32>
    %13 = arith.subf %5, %12 : vector<16x128xf32>
    %cst_7 = arith.constant dense<0.000000e+00> : vector<16xf32>
    %14 = vector.multi_reduction <add>, %13, %cst_7 [1] : vector<16x128xf32> to vector<16xf32>
    %15 = vector.shape_cast %14 : vector<16xf32> to vector<16x1xf32>
    %cst_8 = arith.constant 1.000000e+00 : f32
    %16 = vector.broadcast %cst_8 : f32 to vector<16x1xf32>
    %17 = arith.addf %16, %10 : vector<16x1xf32>
    %cst_9 = arith.constant 0.000000e+00 : f32
    %18 = vector.broadcast %cst_9 : f32 to vector<16x1xf32>
    %19 = arith.maximumf %17, %18 : vector<16x1xf32>
    %cst_10 = arith.constant 5.000000e-01 : f32
    %20 = vector.broadcast %cst_10 : f32 to vector<16x1xf32>
    %21 = arith.addf %20, %15 : vector<16x1xf32>
    %cst_11 = arith.constant 0.000000e+00 : f32
    %22 = vector.broadcast %cst_11 : f32 to vector<16x1xf32>
    %23 = arith.maximumf %21, %22 : vector<16x1xf32>
    %24 = arith.addf %19, %23 : vector<16x1xf32>
    %c16_i32 = arith.constant 16 : i32
    %25 = arith.muli %arg0, %c16_i32 : i32
    %26 = tpu.iota {dimensions = array<i32: 0>} : vector<16x1xi32>
    %27 = vector.broadcast %25 : i32 to vector<16x1xi32>
    %28 = arith.addi %27, %26 : vector<16x1xi32>
    %c10_i32 = arith.constant 10 : i32
    %29 = vector.broadcast %c10_i32 : i32 to vector<16x1xi32>
    %30 = arith.cmpi slt, %28, %29 : vector<16x1xi32>
    %cst_12 = arith.constant 0.000000e+00 : f32
    %31 = vector.broadcast %cst_12 : f32 to vector<16x1xf32>
    %32 = arith.select %30, %24, %31 : vector<16x1xi1>, vector<16x1xf32>
    %33 = vector.shape_cast %32 : vector<16x1xf32> to vector<1x16x1xf32>
    %cst_13 = arith.constant dense<0.000000e+00> : vector<1xf32>
    %34 = vector.multi_reduction <add>, %33, %cst_13 [1, 2] : vector<1x16x1xf32> to vector<1xf32>
    %35 = vector.shape_cast %34 : vector<1xf32> to vector<1x1x1xf32>
    %36 = vector.extract %35[0, 0, 0] : f32 from vector<1x1x1xf32>
    %37 = vector.broadcast %36 : f32 to vector<1x128xf32>
    %c0_14 = arith.constant 0 : index
    %c0_15 = arith.constant 0 : index
    %38 = vector.load %arg5[%c0_14, %c0_15] : memref<1x128xf32, #tpu.memory_space<vmem>>, vector<1x128xf32>
    tpu.vector_store %arg5[%c0_14, %c0_15], %37 {strides = array<i32>} : memref<1x128xf32, #tpu.memory_space<vmem>>, vector<1x128xf32>,
    return
  }
  func.func @transform_0(%arg0: i32) -> (i32, i32) {
    %c0_i32 = arith.constant 0 : i32
    %c0_i32_0 = arith.constant 0 : i32
    return %arg0, %c0_i32 : i32, i32
  }
  func.func @transform_1(%arg0: i32) -> (i32, i32) {
    %c0_i32 = arith.constant 0 : i32
    %c0_i32_0 = arith.constant 0 : i32
    return %arg0, %c0_i32 : i32, i32
  }
  func.func @transform_2(%arg0: i32) -> (i32, i32) {
    %c0_i32 = arith.constant 0 : i32
    %c0_i32_0 = arith.constant 0 : i32
    return %arg0, %c0_i32 : i32, i32
  }
  func.func @transform_3(%arg0: i32) -> (i32, i32) {
    %c0_i32 = arith.constant 0 : i32
    %c0_i32_0 = arith.constant 0 : i32
    return %arg0, %c0_i32 : i32, i32
  }
  func.func @transform_4(%arg0: i32) -> (i32, i32) {
    %c0_i32 = arith.constant 0 : i32
    %c0_i32_0 = arith.constant 0 : i32
    return %c0_i32, %arg0 : i32, i32
  }
}

</mosaic_0001>

<bundles_post_ra>
// kernel: tpu_custom_call.1
= control target key start
LH: loop header
LB: loop body
LE: loop exit
PB: predicated region body
PF: predicated region fallthrough
CT: control target
= control target key end

     0   :  { %9 = vsyncpa [#allocation3], 0  ;;  %s334_s0 = inlined_call_operand.hbm [shape: f32[16,128], index: 0, kind: input, shape index: {}]   ;;  %s335_s1 = inlined_call_operand.hbm [shape: f32[16,128], index: 1, kind: input, shape index: {}]   ;;  %s336_s2 = inlined_call_operand.hbm [shape: f32[16,128], index: 2, kind: input, shape index: {}]   ;;  %s337_s3 = inlined_call_operand.hbm [shape: f32[16,128], index: 3, kind: input, shape index: {}]   ;;  %s338_s4 = inlined_call_operand.hbm [shape: f32[1,128], index: 4, kind: output, shape index: {}]  }
   0x1   :  { %10 = vsyncpa [#allocation6], 0 }
   0x2   :  { %11 = vsyncpa [#allocation9], 0 }
   0x3   :  { %12 = vsyncpa [#allocation4], 0  ;;  %s275_s15 = smov [#allocation5]   ;;  %s276_s17 = smov [#allocation2]  }
   0x4   :  { %s30_s16 = sshll.u32 %s275_s15, 4  ;;  %s18_s18 = sshll.u32 %s276_s17, 4  ;;  %s31_s16 = int_to_ptr.vmem [resolvable:$true] %s30_s16  ;;  %s19_s18 = int_to_ptr.vmem [resolvable:$true] %s18_s18 }
   0x5   :  { %s175_s19 = scalar_lea.vmem %s31_s16, 256  ;;  %p180_p1 = scmp.lt.s32.totalorder %s31_s16, %s31_s16 }
   0x6   :  { %p176_p0 = scmp.ne.s32.totalorder %s31_s16, %s175_s19  ;;  %p181_p2 = scmp.lt.s32.totalorder %s175_s19, %s175_s19 }
   0x8   :  { %p182_p3 = por %p181_p2, %p180_p1 }
   0xa   :  { %p183_p4 = pnand %p182_p3, %p176_p0 }
   0xc   :  { %186 = shalt.err (!%p183_p4)
}
   0xd   :  { %s277_s20 = smov 128   ;;  %s278_s21 = smov 8  }
   0xe   :  { %36 = dma.hbm_to_vmem [thread:$0]  %s335_s1, 256, %s31_s16, [#allocation6], %s277_s20, %s277_s20, %s278_s21  }
   0xf   :  { %s195_s24 = scalar_lea.vmem %s19_s18, 256  ;;  %p200_p6 = scmp.lt.s32.totalorder %s19_s18, %s19_s18 }
  0x10   :  { %p196_p5 = scmp.ne.s32.totalorder %s19_s18, %s195_s24  ;;  %p201_p7 = scmp.lt.s32.totalorder %s195_s24, %s195_s24 }
  0x12   :  { %p202_p8 = por %p201_p7, %p200_p6 }
  0x14   :  { %p203_p9 = pnand %p202_p8, %p196_p5 }
  0x16   :  { %206 = shalt.err (!%p203_p9)
}
  0x17   :  { %24 = dma.hbm_to_vmem [thread:$0]  %s334_s0, 256, %s19_s18, [#allocation3], %s277_s20, %s277_s20, %s278_s21  }
  0x18   :  { %s279_s27 = smov [#allocation7]   ;;  %s280_s29 = smov [#allocation8]  }
  0x19   :  { %s42_s28 = sshll.u32 %s279_s27, 4  ;;  %s54_s30 = sshll.u32 %s280_s29, 4  ;;  %s43_s28 = int_to_ptr.vmem [resolvable:$true] %s42_s28  ;;  %s55_s30 = int_to_ptr.vmem [resolvable:$true] %s54_s30 }
  0x1a   :  { %s215_s1 = scalar_lea.vmem %s43_s28, 256  ;;  %p220_p11 = scmp.lt.s32.totalorder %s43_s28, %s43_s28 }
  0x1b   :  { %p216_p10 = scmp.ne.s32.totalorder %s43_s28, %s215_s1  ;;  %p221_p12 = scmp.lt.s32.totalorder %s215_s1, %s215_s1 }
  0x1d   :  { %p222_p13 = por %p221_p12, %p220_p11 }
  0x1f   :  { %p223_p0 = pnand %p222_p13, %p216_p10 }
  0x21   :  { %226 = shalt.err (!%p223_p0)
}
  0x22   :  { %48 = dma.hbm_to_vmem [thread:$0]  %s336_s2, 256, %s43_s28, [#allocation6], %s277_s20, %s277_s20, %s278_s21  }
  0x23   :  { %s235_s0 = scalar_lea.vmem %s55_s30, 256  ;;  %p240_p2 = scmp.lt.s32.totalorder %s55_s30, %s55_s30 }
  0x24   :  { %p236_p1 = scmp.ne.s32.totalorder %s55_s30, %s235_s0  ;;  %p241_p3 = scmp.lt.s32.totalorder %s235_s0, %s235_s0 }
  0x26   :  { %p242_p4 = por %p241_p3, %p240_p2 }
  0x28   :  { %p243_p5 = pnand %p242_p4, %p236_p1 }
  0x2a   :  { %246 = shalt.err (!%p243_p5)
}
  0x2b   :  { %60 = dma.hbm_to_vmem [thread:$0]  %s337_s3, 256, %s55_s30, [#allocation9], %s277_s20, %s277_s20, %s278_s21  }
  0x2c   :  { %267 = dma.done.wait [#allocation3], 256  }
  0x2d   :  { %268 = vsyncadd [#allocation3], 4294967040 }
  0x2e   :  { %269 = dma.done.wait [#allocation6], 512  }
  0x2f   :  { %270 = vsyncadd [#allocation6], 4294966784 }
  0x30   :  { %271 = dma.done.wait [#allocation9], 256  }
  0x31   :  { %272 = vsyncadd [#allocation9], 4294967040  ;;  %v74_v0 = vld [vmem:[#allocation2 + $0x8] sm:$0xff]  ;;  %v76_v1 = vld [vmem:[#allocation5 + $0x8] sm:$0xff]  ;;  %v116_v24 = vlaneseq  ;;  %vm126_vm1 = vcmask 7168   ;;  %s281_s2 = smov [#allocation10]  }
  0x32   :  { %v78_v2 = vld [vmem:[#allocation7 + $0x8] sm:$0xff]  ;;  %v82_v3 = vsub.f32 %v74_v0, %v76_v1  ;;  %v73_v5 = vld [vmem:[#allocation2] sm:$0xff]  ;;  %v75_v6 = vld [vmem:[#allocation5] sm:$0xff]  ;;  %s147_s3 = sshll.u32 %s281_s2, 4  ;;  %s148_s3 = int_to_ptr.vmem [resolvable:$true] %s147_s3 }
  0x33   :  { %v86_v4 = vsub.f32 %v74_v0, %v78_v2  ;;  %v77_v7 = vld [vmem:[#allocation7] sm:$0xff]  ;;  %v81_v8 = vsub.f32 %v73_v5, %v75_v6  ;;  %v80_v10 = vld [vmem:[#allocation8 + $0x8] sm:$0xff]  ;;  %v79_v11 = vld [vmem:[#allocation8] sm:$0xff]  ;;  %v117_v26 = vshrl.u32 %v116_v24, 7  ;;  %s247_s10 = scalar_lea.vmem %s148_s3, 16  ;;  %s251_s11 = scalar_lea.vmem %s148_s3, 32 }
  0x34   :  { %v85_v9 = vsub.f32 %v73_v5, %v77_v7  ;;  %v84_v12 = vmul.f32 %v82_v3, %v82_v3  ;;  %v96_v14 = vsub.f32 %v78_v2, %v80_v10  ;;  %v95_v15 = vsub.f32 %v77_v7, %v79_v11  ;;  %p248_p6 = scmp.ne.s32.totalorder %s148_s3, %s247_s10  ;;  %p252_p7 = scmp.lt.s32.totalorder %s148_s3, %s148_s3 }
  0x35   :  { %v88_v13 = vmul.f32 %v86_v4, %v86_v4  ;;  %v83_v16 = vmul.f32 %v81_v8, %v81_v8  ;;  %v118_v31 = vadd.s32 8, %v117_v26  ;;  %p253_p8 = scmp.lt.s32.totalorder %s251_s11, %s247_s10 }
  0x36   :  { %v87_v17 = vmul.f32 %v85_v9, %v85_v9  ;;  %v98_v19 = vmul.f32 %v96_v14, %v96_v14  ;;  %v97_v20 = vmul.f32 %v95_v15, %v95_v15 }
  0x37   :  { %v90_v18 = vsub.f32 %v84_v12, %v88_v13  ;;  %vm123_vm0 = vcmp.lt.s32.totalorder %v118_v31, 10  ;;  %p254_p9 = por %p253_p8, %p252_p7 }
  0x38   :  { %v89_v21 = vsub.f32 %v83_v16, %v87_v17  ;;  %v100_v22 = vsub.f32 %v84_v12, %v98_v19  ;;  %v99_v23 = vsub.f32 %v83_v16, %v97_v20 }
  0x39   :  { %93 = vadd.xlane.f32.xlu0 %v90_v18  ;;  %p255_p10 = pnand %p254_p9, %p248_p6 }
  0x3a   :  { %91 = vadd.xlane.f32.xlu1 %v89_v21 }
  0x3d   :  { %103 = vadd.xlane.f32.xlu0 %v100_v22 }
  0x3e   :  { %101 = vadd.xlane.f32.xlu1 %v99_v23 }
  0xc2   :  { %v94_v25 = vpop.xlane.xlu0 %93 }
  0xc3   :  { %v92_v27 = vpop.xlane.xlu1 %91  ;;  %v106_v28 = vadd.f32 1.0, %v94_v25 }
  0xc4   :  { %v105_v29 = vadd.f32 1.0, %v92_v27 }
  0xc5   :  { %v108_v35 = vmax.f32 %v106_v28, 0.0 }
  0xc6   :  { %v104_v30 = vpop.xlane.xlu0 %103  ;;  %v107_v37 = vmax.f32 %v105_v29, 0.0 }
  0xc7   :  { %v110_v32 = vadd.f32 0.5, %v104_v30  ;;  %v102_v33 = vpop.xlane.xlu1 %101 }
  0xc8   :  { %v109_v34 = vadd.f32 0.5, %v102_v33 }
  0xc9   :  { %v112_v36 = vmax.f32 %v110_v32, 0.0 }
  0xca   :  { %v111_v38 = vmax.f32 %v109_v34, 0.0 }
  0xcb   :  { %v114_v39 = vadd.f32 %v112_v36, %v108_v35 }
  0xcc   :  { %v113_v40 = vadd.f32 %v111_v38, %v107_v37 }
  0xcd   :  { %v125_v41 = vsel %vm123_vm0, %v114_v39, 0.0 }
  0xce   :  { %v127_v42 = vsel %vm126_vm1, %v113_v40, 0.0  ;;  %v128_v43 = vsel %vm126_vm1, %v125_v41, 0.0 }
  0xcf   :  { %v129_v44 = vadd.f32 %v128_v43, %v127_v42 }
  0xd1   :  { %130 = vadd.xlane.f32.xlu0 %v129_v44 }
 0x15a   :  { %v131_v45 = vpop.xlane.xlu0 %130 }
 0x15b   :  { %v132_v46 = vrot.slane %v131_v45, 4 }
 0x15d   :  { %v133_v47 = vadd.f32 %v132_v46, %v131_v45 }
 0x15f   :  { %v134_v48 = vrot.slane %v133_v47, 2 }
 0x161   :  { %v135_v49 = vadd.f32 %v134_v48, %v133_v47 }
 0x163   :  { %v136_v50 = vrot.slane %v135_v49, 1 }
 0x165   :  { %v137_v51 = vadd.f32 %v136_v50, %v135_v49 }
 0x167   :  { %158 = vpush %v137_v51 }
 0x198   :  { %s159_s9 = spop %158 }
 0x199   :  { %v139_v52 = vstv %s159_s9 }
 0x19a   :  { %140 = vst [vmem:[#allocation10] sm:$0x1] %v139_v52 }
 0x19b   :  { %258 = shalt.err (!%p255_p10)
}
 0x19c   :  { %150 = dma.vmem_to_hbm [thread:$0]  %s148_s3, 16, %s338_s4, [#allocation4]  }
 0x19d   :  { %273 = dma.done.wait [#allocation4], 16  }
 0x19e   :  { %274 = vsyncadd [#allocation4], 4294967280 }
 0x19f   :  { %154 = vsyncpa [#allocation3], 1 }
 0x1a0   :  { %155 = vsyncpa [#allocation6], 1 }
 0x1a1   :  { %156 = vsyncpa [#allocation9], 1 }
 0x1a2   :  { %157 = vsyncpa [#allocation4], 1 }

</bundles_post_ra>
